<compile_context>
chip_gen: v7x
topology: tpu7x:2x2x1
jax: 0.10.0
libtpu: 0.0.40
codegen_flags: <defaults>
</compile_context>

<pallas_src>
import functools

import jax
import jax.numpy as jnp
from jax.experimental import pallas as pl
from jax.experimental.pallas import tpu as pltpu


def _round_up(x: int, m: int) -> int:
    return ((x + m - 1) // m) * m


def _sac_dqn_kernel(obs_ref, act_ref, w1o_ref, w1a_ref, b1_ref,
                    w2_ref, b2_ref, wq_ref, bq_ref, out_ref):
    # fc1 on the (virtually) concatenated [obs, action] input — concat fused by
    # splitting w1 into its obs / action row blocks.
    h1 = (jnp.dot(obs_ref[...], w1o_ref[...], preferred_element_type=jnp.float32)
          + jnp.dot(act_ref[...], w1a_ref[...], preferred_element_type=jnp.float32)
          + b1_ref[...].astype(jnp.float32))
    h1 = jnp.maximum(h1, 0.0)                                    # relu (f32 VPU)

    h2 = (jnp.dot(h1.astype(w2_ref.dtype), w2_ref[...],
                  preferred_element_type=jnp.float32)
          + b2_ref[...].astype(jnp.float32))
    h2 = jnp.maximum(h2, 0.0)                                    # relu (f32 VPU)

    # q head (H -> 1): VPU elementwise multiply + XLU lane reduce instead of a
    # 1-column MXU matmul (which would use 1/128..1/256 of the MXU columns).
    q = jnp.sum(h2 * wq_ref[...].astype(jnp.float32), axis=-1, keepdims=True)
    q = q + bq_ref[0, 0]

    # Lane-dense store: broadcast the (TB, 1) q over 128 lanes; the wrapper
    # slices [:, :1].  Unmasked vst + dense writeback DMA.
    out_ref[...] = jnp.broadcast_to(q, out_ref.shape).astype(out_ref.dtype)


def sac_dqn_forward(obs, action, params, *, tile_b: int = 256,
                    compute_dtype=jnp.float32):
    """Pallas TPU forward of SAC_DQN. obs: (B, obs_size), action: (B, action_dim).

    compute_dtype=jnp.bfloat16 halves weight/activation DMA bytes on v6e/v7x;
    accumulation, biases and elementwise ops stay f32 (also correct for v5e).
    """
    obs = obs.astype(compute_dtype)
    action = action.astype(compute_dtype)
    B, d_obs = obs.shape
    a_dim = action.shape[1]

    w1 = params["w1"].astype(compute_dtype)
    w2 = params["w2"].astype(compute_dtype)
    wq = params["wq"].astype(compute_dtype)
    b1 = params["b1"].astype(jnp.float32)
    b2 = params["b2"].astype(jnp.float32)
    bq = params["bq"].astype(jnp.float32)          # (1, 1) scalar -> SMEM
    H = w1.shape[1]

    # Fused concat: split fc1 weights into obs / action row blocks.
    w1_obs = w1[:d_obs]                             # (d_obs, H)
    w1_act = w1[d_obs:]                             # (a_dim, H)
    wq_row = wq.reshape(1, H)                       # (1, H) for the VPU reduce

    # Batch tiling: TB rows per grid step (multiple of 8), pad B if needed.
    TB = min(tile_b, _round_up(B, 8))
    TB = _round_up(TB, 8)
    B_pad = _round_up(B, TB)
    if B_pad != B:
        pad = B_pad - B
        obs = jnp.pad(obs, ((0, pad), (0, 0)))
        action = jnp.pad(action, ((0, pad), (0, 0)))

    grid = (B_pad // TB,)

    out = pl.pallas_call(
        _sac_dqn_kernel,
        out_shape=jax.ShapeDtypeStruct((B_pad, 128), jnp.float32),
        grid=grid,
        in_specs=[
            pl.BlockSpec((TB, d_obs), lambda i: (i, 0)),   # obs tile
            pl.BlockSpec((TB, a_dim), lambda i: (i, 0)),   # action tile
            pl.BlockSpec((d_obs, H), lambda i: (0, 0)),    # w1_obs (resident)
            pl.BlockSpec((a_dim, H), lambda i: (0, 0)),    # w1_act (resident)
            pl.BlockSpec((1, H), lambda i: (0, 0)),        # b1
            pl.BlockSpec((H, H), lambda i: (0, 0)),        # w2 (resident)
            pl.BlockSpec((1, H), lambda i: (0, 0)),        # b2
            pl.BlockSpec((1, H), lambda i: (0, 0)),        # wq row
            pl.BlockSpec(memory_space=pltpu.MemorySpace.SMEM),  # bq scalar
        ],
        out_specs=pl.BlockSpec((TB, 128), lambda i: (i, 0)),
        compiler_params=pltpu.CompilerParams(
            dimension_semantics=("parallel",)),    # batch axis -> both v7x TCs
    )(obs, action, w1_obs, w1_act, b1, w2, b2, wq_row, bq)

    return out[:B, :1]


def init_params(key, obs_size, action_dim, hidden_size):
    """Mirror nn.Linear init U(-1/sqrt(fan_in), +1/sqrt(fan_in)).
    Weights stored as [in_features, out_features]."""
    ks = jax.random.split(key, 6)
    d_in = obs_size + action_dim

    def lin(kw, kb, fan_in, fan_out):
        bound = 1.0 / jnp.sqrt(jnp.float32(fan_in))
        w = jax.random.uniform(kw, (fan_in, fan_out), jnp.float32, -bound, bound)
        b = jax.random.uniform(kb, (1, fan_out), jnp.float32, -bound, bound)
        return w, b

    w1, b1 = lin(ks[0], ks[1], d_in, hidden_size)
    w2, b2 = lin(ks[2], ks[3], hidden_size, hidden_size)
    wq, bq = lin(ks[4], ks[5], hidden_size, 1)
    return {"w1": w1, "b1": b1, "w2": w2, "b2": b2, "wq": wq, "bq": bq}


def sac_dqn_forward_ref(obs, action, params):
    """Pure-JAX reference (matches the PyTorch forward)."""
    x = jnp.concatenate([obs.astype(jnp.float32), action.astype(jnp.float32)],
                        axis=-1)
    h1 = jnp.maximum(x @ params["w1"] + params["b1"], 0.0)
    h2 = jnp.maximum(h1 @ params["w2"] + params["b2"], 0.0)
    return h2 @ params["wq"] + params["bq"]


# TODO(synk): the module's unused `self.softmax` attribute and the numpy->tensor
# device transfer in forward() are host-side glue with no kernel equivalent.

if __name__ == "__main__":
    key = jax.random.PRNGKey(0)
    k_p, k_o, k_a = jax.random.split(key, 3)

    batch = 10          # deliberately not a multiple of 8 to exercise padding
    obs_size = 16
    action_dim = 4
    hidden_size = 128

    params = init_params(k_p, obs_size, action_dim, hidden_size)
    obs = jax.random.normal(k_o, (batch, obs_size), jnp.float32)
    action = jax.random.normal(k_a, (batch, action_dim), jnp.float32)

    q = sac_dqn_forward(obs, action, params)
    q = jax.block_until_ready(q)

    q_ref = sac_dqn_forward_ref(obs, action, params)
    assert q.shape == (batch, 1), q.shape
    assert jnp.allclose(q, q_ref, atol=1e-4, rtol=1e-4), (q, q_ref)

    print("KERNEL_OK")
</pallas_src>

<mosaic_0001>
module attributes {stable_mosaic.version = 11 : i64} {
  func.func @_sac_dqn_kernel(%arg0: i32, %arg1: memref<16x16xf32, #tpu.memory_space<vmem>>, %arg2: memref<16x4xf32, #tpu.memory_space<vmem>>, %arg3: memref<16x128xf32, #tpu.memory_space<vmem>>, %arg4: memref<4x128xf32, #tpu.memory_space<vmem>>, %arg5: memref<1x128xf32, #tpu.memory_space<vmem>>, %arg6: memref<128x128xf32, #tpu.memory_space<vmem>>, %arg7: memref<1x128xf32, #tpu.memory_space<vmem>>, %arg8: memref<1x128xf32, #tpu.memory_space<vmem>>, %arg9: memref<1x1xf32, #tpu.memory_space<smem>>, %arg10: memref<16x128xf32, #tpu.memory_space<vmem>>) attributes {dimension_semantics = [#tpu.dimension_semantics<parallel>], iteration_bounds = array<i64: 1>, scalar_prefetch = 0 : i64, scratch_operands = 0 : i64, tpu.core_type = #tpu.core_type<tc>, window_params = [{transform_indices = @transform_0, window_bounds = array<i64: 16, 16>}, {transform_indices = @transform_1, window_bounds = array<i64: 16, 4>}, {pipeline_mode = #tpu.pipeline_mode<synchronous>, transform_indices = @transform_2, window_bounds = array<i64: 16, 128>}, {pipeline_mode = #tpu.pipeline_mode<synchronous>, transform_indices = @transform_3, window_bounds = array<i64: 4, 128>}, {pipeline_mode = #tpu.pipeline_mode<synchronous>, transform_indices = @transform_4, window_bounds = array<i64: 1, 128>}, {pipeline_mode = #tpu.pipeline_mode<synchronous>, transform_indices = @transform_5, window_bounds = array<i64: 128, 128>}, {pipeline_mode = #tpu.pipeline_mode<synchronous>, transform_indices = @transform_6, window_bounds = array<i64: 1, 128>}, {pipeline_mode = #tpu.pipeline_mode<synchronous>, transform_indices = @transform_7, window_bounds = array<i64: 1, 128>}, {transform_indices = @transform_8, window_bounds = array<i64: 1, 1>}, {transform_indices = @transform_9, window_bounds = array<i64: 16, 128>}]} {
    %c0 = arith.constant 0 : index
    %c0_0 = arith.constant 0 : index
    %0 = vector.load %arg1[%c0, %c0_0] : memref<16x16xf32, #tpu.memory_space<vmem>>, vector<16x16xf32>
    %c0_1 = arith.constant 0 : index
    %c0_2 = arith.constant 0 : index
    %1 = vector.load %arg3[%c0_1, %c0_2] : memref<16x128xf32, #tpu.memory_space<vmem>>, vector<16x128xf32>
    %cst = arith.constant dense<0.000000e+00> : vector<16x128xf32>
    %2 = tpu.matmul %0, %1, %cst {dimension_numbers = #tpu.dot_dimension_numbers<[1], [0], [0], [1], [0, 0, 1, 1], [], []>} : vector<16x16xf32>, vector<16x128xf32>, vector<16x128xf32> -> vector<16x128xf32>
    %c0_3 = arith.constant 0 : index
    %c0_4 = arith.constant 0 : index
    %3 = vector.load %arg2[%c0_3, %c0_4] : memref<16x4xf32, #tpu.memory_space<vmem>>, vector<16x4xf32>
    %c0_5 = arith.constant 0 : index
    %c0_6 = arith.constant 0 : index
    %4 = vector.load %arg4[%c0_5, %c0_6] : memref<4x128xf32, #tpu.memory_space<vmem>>, vector<4x128xf32>
    %cst_7 = arith.constant dense<0.000000e+00> : vector<16x128xf32>
    %5 = tpu.matmul %3, %4, %cst_7 {dimension_numbers = #tpu.dot_dimension_numbers<[1], [0], [0], [1], [0, 0, 1, 1], [], []>} : vector<16x4xf32>, vector<4x128xf32>, vector<16x128xf32> -> vector<16x128xf32>
    %6 = arith.addf %2, %5 : vector<16x128xf32>
    %c0_8 = arith.constant 0 : index
    %c0_9 = arith.constant 0 : index
    %7 = vector.load %arg5[%c0_8, %c0_9] : memref<1x128xf32, #tpu.memory_space<vmem>>, vector<1x128xf32>
    %8 = vector.broadcast %7 : vector<1x128xf32> to vector<16x128xf32>
    %9 = arith.addf %6, %8 : vector<16x128xf32>
    %cst_10 = arith.constant 0.000000e+00 : f32
    %10 = vector.broadcast %cst_10 : f32 to vector<16x128xf32>
    %11 = arith.maximumf %9, %10 : vector<16x128xf32>
    %c0_11 = arith.constant 0 : index
    %c0_12 = arith.constant 0 : index
    %12 = vector.load %arg6[%c0_11, %c0_12] : memref<128x128xf32, #tpu.memory_space<vmem>>, vector<128x128xf32>
    %cst_13 = arith.constant dense<0.000000e+00> : vector<16x128xf32>
    %13 = tpu.matmul %11, %12, %cst_13 {dimension_numbers = #tpu.dot_dimension_numbers<[1], [0], [0], [1], [0, 0, 1, 1], [], []>} : vector<16x128xf32>, vector<128x128xf32>, vector<16x128xf32> -> vector<16x128xf32>
    %c0_14 = arith.constant 0 : index
    %c0_15 = arith.constant 0 : index
    %14 = vector.load %arg7[%c0_14, %c0_15] : memref<1x128xf32, #tpu.memory_space<vmem>>, vector<1x128xf32>
    %15 = vector.broadcast %14 : vector<1x128xf32> to vector<16x128xf32>
    %16 = arith.addf %13, %15 : vector<16x128xf32>
    %cst_16 = arith.constant 0.000000e+00 : f32
    %17 = vector.broadcast %cst_16 : f32 to vector<16x128xf32>
    %18 = arith.maximumf %16, %17 : vector<16x128xf32>
    %c0_17 = arith.constant 0 : index
    %c0_18 = arith.constant 0 : index
    %19 = vector.load %arg8[%c0_17, %c0_18] : memref<1x128xf32, #tpu.memory_space<vmem>>, vector<1x128xf32>
    %20 = vector.broadcast %19 : vector<1x128xf32> to vector<16x128xf32>
    %21 = arith.mulf %18, %20 : vector<16x128xf32>
    %cst_19 = arith.constant dense<0.000000e+00> : vector<16xf32>
    %22 = vector.multi_reduction <add>, %21, %cst_19 [1] : vector<16x128xf32> to vector<16xf32>
    %23 = vector.shape_cast %22 : vector<16xf32> to vector<16x1xf32>
    %c0_20 = arith.constant 0 : index
    %c0_21 = arith.constant 0 : index
    %24 = memref.load %arg9[%c0_20, %c0_21] : memref<1x1xf32, #tpu.memory_space<smem>>
    %25 = vector.broadcast %24 : f32 to vector<16x1xf32>
    %26 = arith.addf %23, %25 : vector<16x1xf32>
    %27 = vector.shape_cast %26 : vector<16x1xf32> to vector<16x1xf32>
    %28 = vector.broadcast %27 : vector<16x1xf32> to vector<16x128xf32>
    %c0_22 = arith.constant 0 : index
    %c0_23 = arith.constant 0 : index
    %29 = vector.load %arg10[%c0_22, %c0_23] : memref<16x128xf32, #tpu.memory_space<vmem>>, vector<16x128xf32>
    tpu.vector_store %arg10[%c0_22, %c0_23], %28 {strides = array<i32>} : memref<16x128xf32, #tpu.memory_space<vmem>>, vector<16x128xf32>,
    return
  }
  func.func @transform_0(%arg0: i32) -> (i32, i32) {
    %c0_i32 = arith.constant 0 : i32
    %c0_i32_0 = arith.constant 0 : i32
    return %arg0, %c0_i32 : i32, i32
  }
  func.func @transform_1(%arg0: i32) -> (i32, i32) {
    %c0_i32 = arith.constant 0 : i32
    %c0_i32_0 = arith.constant 0 : i32
    return %arg0, %c0_i32 : i32, i32
  }
  func.func @transform_2(%arg0: i32) -> (i32, i32) {
    %c0_i32 = arith.constant 0 : i32
    %c0_i32_0 = arith.constant 0 : i32
    %c0_i32_1 = arith.constant 0 : i32
    return %c0_i32, %c0_i32_0 : i32, i32
  }
  func.func @transform_3(%arg0: i32) -> (i32, i32) {
    %c0_i32 = arith.constant 0 : i32
    %c0_i32_0 = arith.constant 0 : i32
    %c0_i32_1 = arith.constant 0 : i32
    return %c0_i32, %c0_i32_0 : i32, i32
  }
  func.func @transform_4(%arg0: i32) -> (i32, i32) {
    %c0_i32 = arith.constant 0 : i32
    %c0_i32_0 = arith.constant 0 : i32
    %c0_i32_1 = arith.constant 0 : i32
    return %c0_i32, %c0_i32_0 : i32, i32
  }
  func.func @transform_5(%arg0: i32) -> (i32, i32) {
    %c0_i32 = arith.constant 0 : i32
    %c0_i32_0 = arith.constant 0 : i32
    %c0_i32_1 = arith.constant 0 : i32
    return %c0_i32, %c0_i32_0 : i32, i32
  }
  func.func @transform_6(%arg0: i32) -> (i32, i32) {
    %c0_i32 = arith.constant 0 : i32
    %c0_i32_0 = arith.constant 0 : i32
    %c0_i32_1 = arith.constant 0 : i32
    return %c0_i32, %c0_i32_0 : i32, i32
  }
  func.func @transform_7(%arg0: i32) -> (i32, i32) {
    %c0_i32 = arith.constant 0 : i32
    %c0_i32_0 = arith.constant 0 : i32
    %c0_i32_1 = arith.constant 0 : i32
    return %c0_i32, %c0_i32_0 : i32, i32
  }
  func.func @transform_8(%arg0: i32) -> (i32, i32) {
    %c0_i32 = arith.constant 0 : i32
    %c0_i32_0 = arith.constant 0 : i32
    %c0_i32_1 = arith.constant 0 : i32
    return %c0_i32, %c0_i32_0 : i32, i32
  }
  func.func @transform_9(%arg0: i32) -> (i32, i32) {
    %c0_i32 = arith.constant 0 : i32
    %c0_i32_0 = arith.constant 0 : i32
    return %arg0, %c0_i32 : i32, i32
  }
}

</mosaic_0001>

<bundles_post_ra>
// kernel: tpu_custom_call.1
= control target key start
LH: loop header
LB: loop body
LE: loop exit
PB: predicated region body
PF: predicated region fallthrough
CT: control target
= control target key end

     0   :  { %15 = vsyncpa [#allocation4], 0  ;;  %s709_s0 = inlined_call_operand.vmem [shape: f32[16,16], index: 0, kind: input, shape index: {}]   ;;  %s710_s1 = inlined_call_operand.vmem [shape: f32[16,4], index: 1, kind: input, shape index: {}]   ;;  %s711_s2 = inlined_call_operand.hbm [shape: f32[16,128], index: 2, kind: input, shape index: {}]   ;;  %s712_s3 = inlined_call_operand.vmem [shape: f32[4,128], index: 3, kind: input, shape index: {}]   ;;  %s713_s4 = inlined_call_operand.vmem [shape: f32[1,128], index: 4, kind: input, shape index: {}]   ;;  %s714_s5 = inlined_call_operand.hbm [shape: f32[128,128], index: 5, kind: input, shape index: {}]   ;;  %s715_s6 = inlined_call_operand.vmem [shape: f32[1,128], index: 6, kind: input, shape index: {}]   ;;  %s716_s7 = inlined_call_operand.vmem [shape: f32[1,128], index: 7, kind: input, shape index: {}]   ;;  %s717_s8 = inlined_call_operand.<no memory space> [shape: f32[1,1], index: 8, kind: input, shape index: {}]   ;;  %s718_s9 = inlined_call_operand.hbm [shape: f32[16,128], index: 9, kind: output, shape index: {}]  }
   0x1   :  { %16 = vsyncpa [#allocation7], 0 }
   0x2   :  { %17 = vsyncpa [#allocation5], 0  ;;  %s580_s30 = smov [#allocation3]   ;;  %s508_s13 = scalar_lea.hbm %s711_s2, 256 }
   0x3   :  { %s27_s10 = sshll.u32 %s580_s30, 4  ;;  %p509_p0 = scmp.ne.s32.totalorder %s711_s2, %s508_s13  ;;  %s28_s10 = int_to_ptr.vmem [resolvable:$true] %s27_s10 }
   0x4   :  { %p512_p1 = scmp.lt.u32.totalorder %s508_s13, %s711_s2 }
   0x6   :  { %p514_p2 = pnand %p512_p1, %p509_p0 }
   0x8   :  { %517 = shalt.err (!%p514_p2)
}
   0x9   :  { %s518_s18 = scalar_lea.vmem %s28_s10, 256  ;;  %p523_p4 = scmp.lt.s32.totalorder %s28_s10, %s28_s10 }
   0xa   :  { %p519_p3 = scmp.ne.s32.totalorder %s28_s10, %s518_s18  ;;  %p524_p5 = scmp.lt.s32.totalorder %s518_s18, %s518_s18 }
   0xc   :  { %p525_p6 = por %p524_p5, %p523_p4 }
   0xe   :  { %p526_p7 = pnand %p525_p6, %p519_p3 }
  0x10   :  { %529 = shalt.err (!%p526_p7)
}
  0x11   :  { %s581_s19 = smov 128   ;;  %s582_s20 = smov 8  }
  0x12   :  { %33 = dma.hbm_to_vmem [thread:$0]  %s711_s2, 256, %s28_s10, [#allocation4], %s581_s19, %s581_s19, %s582_s20  }
  0x13   :  { %s583_s23 = smov [#allocation6]   ;;  %s530_s27 = scalar_lea.hbm %s714_s5, 2048 }
  0x14   :  { %s43_s24 = sshll.u32 %s583_s23, 4  ;;  %p531_p8 = scmp.ne.s32.totalorder %s714_s5, %s530_s27  ;;  %s44_s24 = int_to_ptr.vmem [resolvable:$true] %s43_s24 }
  0x15   :  { %p534_p9 = scmp.lt.u32.totalorder %s530_s27, %s714_s5 }
  0x17   :  { %p536_p10 = pnand %p534_p9, %p531_p8 }
  0x19   :  { %539 = shalt.err (!%p536_p10)
}
  0x1a   :  { %s540_s12 = scalar_lea.vmem %s44_s24, 2048  ;;  %p545_p12 = scmp.lt.s32.totalorder %s44_s24, %s44_s24 }
  0x1b   :  { %p541_p11 = scmp.ne.s32.totalorder %s44_s24, %s540_s12  ;;  %p546_p13 = scmp.lt.s32.totalorder %s540_s12, %s540_s12 }
  0x1d   :  { %p547_p0 = por %p546_p13, %p545_p12 }
  0x1f   :  { %p548_p1 = pnand %p547_p0, %p541_p11 }
  0x21   :  { %551 = shalt.err (!%p548_p1)
}
  0x22   :  { %49 = dma.hbm_to_vmem [thread:$0]  %s714_s5, 2048, %s44_s24, [#allocation7], %s581_s19, %s581_s19, %s582_s20  }
  0x23   :  { %574 = dma.done.wait [#allocation4], 256  }
  0x24   :  { %575 = vsyncadd [#allocation4], 4294967040 }
  0x25   :  { %576 = dma.done.wait [#allocation7], 2048  }
  0x26   :  { %577 = vsyncadd [#allocation7], 4294965248  ;;  %vm76_vm0 = vcmask 1043456   ;;  %vm69_vm1 = vcmask 31744   ;;  %v68_v0 = vld [vmem:[%s712_s3] sm:$0xf]  ;;  %v362_v49 = vstv %s717_s8 }
  0x27   :  { %v66_v1 = vld [vmem:[%s710_s1] sm:$0xff]  ;;  %v67_v2 = vld [vmem:[%s710_s1 + $0x8] sm:$0xff]  ;;  %418 = vmatprep.subr.msk.mxu0 %vm76_vm0, %v68_v0  ;;  %vm155_vm2 = vcmask 130048   ;;  %v248_v7 = vld [vmem:[#allocation6] sm:$0xff] }
  0x28   :  { %420 = vmatprep.mubr.msk.f32.mxu0 %vm69_vm1, %v66_v1  ;;  %v64_v3 = vld [vmem:[#allocation3] sm:$0xff]  ;;  %v65_v4 = vld [vmem:[#allocation3 + $0x8] sm:$0xff]  ;;  %419 = vmatpush3.msk.msra.mxu0 %vm76_vm0, %v68_v0  ;;  %v249_v8 = vld [vmem:[#allocation6 + $0x8] sm:$0xff] }
  0x29   :  { %v62_v5 = vld [vmem:[%s709_s0] sm:$0xff]  ;;  %v465_v6 = vpack.c.bf16 %v65_v4, %v64_v3  ;;  %421 = vmatmul.mubr.msk.f32.vlgmr.msra.gmra.mrb[0].mxu0 %vm69_vm1, %v67_v2  ;;  %v469_v9 = vpack.c.bf16 %v249_v8, %v248_v7  ;;  %v251_v11 = vld [vmem:[#allocation6 + $0x18] sm:$0xff]  ;;  %v252_v13 = vld [vmem:[#allocation6 + $0x20] sm:$0xff] }
  0x2a   :  { %v250_v10 = vld [vmem:[#allocation6 + $0x10] sm:$0xff]  ;;  %427 = vmatprep.mubr.msk.f32.mxu0 %vm155_vm2, %v62_v5  ;;  %v253_v14 = vld [vmem:[#allocation6 + $0x28] sm:$0xff]  ;;  %v63_v16 = vld [vmem:[%s709_s0 + $0x8] sm:$0xff] }
  0x2b   :  { %466 = vmatprep.subr.bf16.mxu0 %v465_v6  ;;  %v473_v12 = vpack.c.bf16 %v251_v11, %v250_v10  ;;  %470 = vmatprep.subr.bf16.mxu1 %v469_v9  ;;  %v477_v15 = vpack.c.bf16 %v253_v14, %v252_v13  ;;  %v254_v17 = vld [vmem:[#allocation6 + $0x30] sm:$0xff]  ;;  %v255_v18 = vld [vmem:[#allocation6 + $0x38] sm:$0xff]  ;;  %v256_v20 = vld [vmem:[#allocation6 + $0x40] sm:$0xff] }
  0x2c   :  { %468 = vmatpush3.bf16.msra.mxu0 %v465_v6  ;;  %472 = vmatpush3.bf16.msra.mxu1 %v469_v9  ;;  %v481_v19 = vpack.c.bf16 %v255_v18, %v254_v17  ;;  %v257_v21 = vld [vmem:[#allocation6 + $0x48] sm:$0xff]  ;;  %v258_v23 = vld [vmem:[#allocation6 + $0x50] sm:$0xff]  ;;  %v259_v24 = vld [vmem:[#allocation6 + $0x58] sm:$0xff] }
  0x2d   :  { %474 = vmatprep.subr.bf16.mxu1 %v473_v12  ;;  %v485_v22 = vpack.c.bf16 %v257_v21, %v256_v20  ;;  %v489_v25 = vpack.c.bf16 %v259_v24, %v258_v23  ;;  %v260_v26 = vld [vmem:[#allocation6 + $0x60] sm:$0xff]  ;;  %v261_v27 = vld [vmem:[#allocation6 + $0x68] sm:$0xff]  ;;  %v262_v29 = vld [vmem:[#allocation6 + $0x70] sm:$0xff] }
  0x2e   :  { %v493_v28 = vpack.c.bf16 %v261_v27, %v260_v26  ;;  %v263_v30 = vld [vmem:[#allocation6 + $0x78] sm:$0xff]  ;;  %v390_v32 = vld [vmem:[%s713_s4] ss:$0 sm:$0xff] }
  0x2f   :  { %v497_v31 = vpack.c.bf16 %v263_v30, %v262_v29  ;;  %v391_v39 = vld [vmem:[%s715_s6] ss:$0 sm:$0xff]  ;;  %s584_s6 = smov [#allocation8]  }
  0x30   :  { %476 = vmatpush3.bf16.msra.mxu1 %v473_v12  ;;  %v392_v44 = vld [vmem:[%s716_s7] ss:$0 sm:$0xff]  ;;  %s372_s28 = sshll.u32 %s584_s6, 4  ;;  %s373_s28 = int_to_ptr.vmem [resolvable:$true] %s372_s28 }
  0x31   :  { %428 = vmatmul.mubr.msk.f32.vlgmr.msra.gmra.mrb[0].mxu0 %vm155_vm2, %v63_v16  ;;  %478 = vmatprep.subr.bf16.mxu1 %v477_v15  ;;  %s552_s7 = scalar_lea.vmem %s373_s28, 256  ;;  %p557_p3 = scmp.lt.s32.totalorder %s373_s28, %s373_s28 }
  0x32   :  { %p553_p2 = scmp.ne.s32.totalorder %s373_s28, %s552_s7  ;;  %p558_p4 = scmp.lt.s32.totalorder %s552_s7, %s552_s7 }
  0x34   :  { %480 = vmatpush3.bf16.msra.mxu1 %v477_v15  ;;  %p559_p5 = por %p558_p4, %p557_p3 }
  0x35   :  { %482 = vmatprep.subr.bf16.mxu1 %v481_v19 }
  0x36   :  { %p560_p6 = pnand %p559_p5, %p553_p2 }
  0x38   :  { %484 = vmatpush3.bf16.msra.mxu1 %v481_v19 }
  0x39   :  { %486 = vmatprep.subr.bf16.mxu1 %v485_v22 }
  0x3c   :  { %488 = vmatpush3.bf16.msra.mxu1 %v485_v22 }
  0x3d   :  { %490 = vmatprep.subr.bf16.mxu1 %v489_v25 }
  0x40   :  { %492 = vmatpush3.bf16.msra.mxu1 %v489_v25 }
  0x41   :  { %494 = vmatprep.subr.bf16.mxu1 %v493_v28 }
  0x44   :  { %496 = vmatpush3.bf16.msra.mxu1 %v493_v28 }
  0x45   :  { %498 = vmatprep.subr.bf16.mxu1 %v497_v31 }
  0x48   :  { %500 = vmatpush3.bf16.msra.mxu1 %v497_v31 }
 0x104   :  { %v429_v33 = vpop.f32.mrb[0].mxu0 }
 0x105   :  { %v245_v34 = vadd.f32 %v429_v33, %v390_v32  ;;  %v228_v35 = vpop.f32.mrb[1].mxu0 }
 0x106   :  { %v244_v36 = vadd.f32 %v390_v32, %v228_v35 }
 0x107   :  { %v247_v38 = vmax.f32 %v245_v34, 0.0 }
 0x108   :  { %v246_v37 = vmax.f32 %v244_v36, 0.0 }
 0x10a   :  { %462 = vmatprep.mubr.f32.mxu1 %v246_v37 }
 0x10b   :  { %463 = vmatmul.mubr.f32.vlgmr.msra.gmra.mrb[0].mxu1 %v247_v38 }
 0x1de   :  { %v464_v40 = vpop.f32.mrb[0].mxu1 }
 0x1df   :  { %v337_v41 = vpop.f32.mrb[1].mxu1  ;;  %v343_v42 = vadd.f32 %v464_v40, %v391_v39 }
 0x1e0   :  { %v338_v43 = vadd.f32 %v391_v39, %v337_v41 }
 0x1e1   :  { %v347_v46 = vmax.f32 %v343_v42, 0.0 }
 0x1e2   :  { %v346_v45 = vmax.f32 %v338_v43, 0.0 }
 0x1e3   :  { %v356_v48 = vmul.f32 %v392_v44, %v347_v46 }
 0x1e4   :  { %v355_v47 = vmul.f32 %v392_v44, %v346_v45 }
 0x1e6   :  { %357 = vadd.xlane.f32.xlu0 %v355_v47 }
 0x1ea   :  { %359 = vadd.xlane.f32.xlu0 %v356_v48 }
 0x273   :  { %v358_v50 = vpop.xlane.xlu0 %357 }
 0x274   :  { %v363_v51 = vadd.f32 %v362_v49, %v358_v50 }
 0x276   :  { %365 = vst [vmem:[#allocation8] sm:$0xff] %v363_v51 }
 0x277   :  { %v360_v52 = vpop.xlane.xlu0 %359 }
 0x278   :  { %v364_v53 = vadd.f32 %v362_v49, %v360_v52 }
 0x27a   :  { %366 = vst [vmem:[#allocation8 + $0x8] sm:$0xff] %v364_v53 }
 0x27b   :  { %563 = shalt.err (!%p560_p6)
}
 0x27c   :  { %s564_s8 = scalar_lea.hbm %s718_s9, 256 }
 0x27d   :  { %p565_p7 = scmp.ne.s32.totalorder %s718_s9, %s564_s8  ;;  %p568_p8 = scmp.lt.u32.totalorder %s564_s8, %s718_s9 }
 0x27f   :  { %p570_p9 = pnand %p568_p8, %p565_p7 }
 0x281   :  { %573 = shalt.err (!%p570_p9)
}
 0x282   :  { %378 = dma.vmem_to_hbm [thread:$0]  %s373_s28, 256, %s718_s9, [#allocation5], %s581_s19, %s581_s19, %s582_s20  }
 0x283   :  { %578 = dma.done.wait [#allocation5], 256  }
 0x284   :  { %579 = vsyncadd [#allocation5], 4294967040 }
 0x285   :  { %382 = vsyncpa [#allocation4], 1 }
 0x286   :  { %383 = vsyncpa [#allocation7], 1 }
 0x287   :  { %384 = vsyncpa [#allocation5], 1 }

</bundles_post_ra>
